<compile_context>
chip_gen: v7x
topology: tpu7x:2x2x1
jax: 0.10.0
libtpu: 0.0.40
codegen_flags: <defaults>
</compile_context>

<pallas_src>
import functools

import jax
import jax.numpy as jnp
from jax import lax
from jax.experimental import pallas as pl
from jax.experimental.pallas import tpu as pltpu


def _fusion_conv_kernel(alpha_ref, w_ref, b_ref, x1_ref, x2_ref, xr_ref, o_ref,
                        *, W, PAD):
    # alpha_ref : SMEM (1,)          blend factor
    # w_ref     : VMEM (9, R, R)     per-tap block-diag channel mix: kron(I_B, W[:, :, kh, kw])
    # b_ref     : VMEM (R, 1)        conv bias, one value per (batch, channel) row
    # x1_ref    : VMEM (R, HW)       R = B*C rows (sublane axis), HW flat-spatial lanes
    # x2_ref    : VMEM (R, HW)
    # xr_ref    : VMEM (R, HW)       residual x
    # o_ref     : VMEM (R, HW)       output
    R, HW = x1_ref.shape
    a = alpha_ref[0]

    # Blend with a single multiply: z = x2 + a * (x1 - x2)
    # (reassociation of alpha*x1 + (1-alpha)*x2; differs only by last-bit rounding).
    z = x2_ref[...] + a * (x1_ref[...] - x2_ref[...])                 # (R, HW) f32

    # Zero-padded flat-spatial slab built entirely in registers; PAD = 128 keeps
    # both concatenate seams lane-tile aligned (no VMEM scratch, no store->load dep).
    zpad = jnp.zeros((R, PAD), jnp.float32)
    z_pad = jnp.concatenate([zpad, z, zpad], axis=1)                  # (R, PAD+HW+PAD)

    # 3x3 "same" conv over the flat spatial (lane) axis: for each tap, take the
    # shifted lane window and mix channels with one tiny (R,R)x(R,HW) matmul on the
    # otherwise-idle MXU.  Taps are grouped by kw so the horizontal-border masks
    # are applied once per group instead of per tap.
    acc = [None, None, None]                                          # kw = 0, 1, 2
    for kw in range(3):
        for kh in range(3):
            t = kh * 3 + kw
            start = PAD + (kh - 1) * W + (kw - 1)                     # static lane offset
            # TODO(synk): verify in the bundle dump that these unaligned lane windows
            #             lower to XLU rotates (vrot) rather than vsel chains; if not,
            #             switch to pltpu.roll(z_pad, ...) + aligned interior slice.
            zs = z_pad[:, start:start + HW]                           # (R, HW) shifted window
            contrib = jnp.dot(w_ref[t], zs, preferred_element_type=jnp.float32)
            acc[kw] = contrib if acc[kw] is None else acc[kw] + contrib

    # Horizontally shifted taps must not wrap across image rows: zero kw=0 taps at
    # output column 0 and kw=2 taps at output column W-1 (hoisted: 2 mask multiplies).
    col = lax.broadcasted_iota(jnp.int32, (R, HW), 1) % W
    m_not_first = (col != 0).astype(jnp.float32)
    m_not_last = (col != (W - 1)).astype(jnp.float32)

    # Bias + residual; the store is one dense (8-sublane, 128-lane-multiple) vst.
    o_ref[...] = (acc[1] + m_not_first * acc[0] + m_not_last * acc[2]
                  + b_ref[...] + xr_ref[...])


def fusion_forward(x1_nchw, x2_nchw, alpha, x_nchw, weight_oihw, bias):
    """x1, x2, x: (B, C, H, W) f32; alpha: scalar; weight: (Cout, Cin, 3, 3); bias: (Cout,)."""
    B, C, H, W = x1_nchw.shape
    HW = H * W
    R = B * C
    PAD = 128
    assert W + 1 <= PAD, "flat padding must cover one image row plus one column"
    assert HW % 128 == 0, "lane-dense layout requires H*W to be a multiple of 128"

    # Activations: pure reshapes only (free) -- no HBM-round-trip transposes.
    x1 = x1_nchw.reshape(R, HW)
    x2 = x2_nchw.reshape(R, HW)
    xr = x_nchw.reshape(R, HW)

    # Parameter packing (one-time, parameter-side, tiny):
    #   per-tap block-diagonal channel-mix matrices M_t = kron(I_B, weight[:, :, kh, kw]),
    #   laid out so row index = b*C + c matches the reshaped activation rows.
    w_taps = jnp.transpose(weight_oihw, (2, 3, 0, 1)).reshape(9, C, C).astype(jnp.float32)
    eye_b = jnp.eye(B, dtype=jnp.float32)
    w_mats = jnp.einsum('ab,tij->taibj', eye_b, w_taps).reshape(9, R, R)
    bias_rows = jnp.tile(bias.astype(jnp.float32), B).reshape(R, 1)
    alpha_arr = jnp.asarray(alpha, jnp.float32).reshape(1)

    smem = pl.BlockSpec(memory_space=pltpu.MemorySpace.SMEM)
    vmem = pl.BlockSpec(memory_space=pltpu.MemorySpace.VMEM)

    out_flat = pl.pallas_call(
        functools.partial(_fusion_conv_kernel, W=W, PAD=PAD),
        out_shape=jax.ShapeDtypeStruct((R, HW), jnp.float32),
        in_specs=[smem, vmem, vmem, vmem, vmem, vmem],
        out_specs=vmem,
    )(alpha_arr, w_mats, bias_rows, x1, x2, xr)

    # (B*C, H*W) -> (B, C, H, W): pure reshape, free.
    return out_flat.reshape(B, C, H, W)


def _reference(x1, x2, alpha, x, weight_oihw, bias):
    """Pure-JAX NCHW reference for validation (full f32 precision)."""
    z = alpha * x1 + (1.0 - alpha) * x2
    y = lax.conv_general_dilated(
        z, weight_oihw, window_strides=(1, 1), padding="SAME",
        dimension_numbers=("NCHW", "OIHW", "NCHW"),
        precision=lax.Precision.HIGHEST,
    )
    return y + bias.reshape(1, -1, 1, 1) + x


if __name__ == "__main__":
    B, C, H, W = 2, 4, 16, 16
    key = jax.random.PRNGKey(0)
    k1, k2, k3, kw_key, kb_key = jax.random.split(key, 5)

    x1 = jax.random.normal(k1, (B, C, H, W), jnp.float32)
    x2 = jax.random.normal(k2, (B, C, H, W), jnp.float32)
    x = jax.random.normal(k3, (B, C, H, W), jnp.float32)
    alpha = jnp.float32(0.3)

    # deterministic synthetic conv parameters (PyTorch layout: Cout, Cin, kH, kW)
    weight = jax.random.normal(kw_key, (C, C, 3, 3), jnp.float32) * 0.1
    bias = jax.random.normal(kb_key, (C,), jnp.float32) * 0.1

    out = fusion_forward(x1, x2, alpha, x, weight, bias)
    out = jax.block_until_ready(out)

    ref = _reference(x1, x2, alpha, x, weight, bias)
    assert out.shape == (B, C, H, W)
    # Tolerance accommodates possible bf16-pass rounding in the in-kernel MXU f32
    # matmuls; any semantic error (wrong shift/mask/channel mix) is O(0.1-1) and
    # would still be caught.
    assert jnp.allclose(out, ref, atol=1e-2, rtol=1e-2), "mismatch vs reference"

    print("KERNEL_OK")
</pallas_src>

<mosaic_0001>
module attributes {stable_mosaic.version = 11 : i64} {
  func.func @_fusion_conv_kernel(%arg0: memref<1xf32, #tpu.memory_space<smem>>, %arg1: memref<9x8x8xf32, #tpu.memory_space<vmem>>, %arg2: memref<8x1xf32, #tpu.memory_space<vmem>>, %arg3: memref<8x256xf32, #tpu.memory_space<vmem>>, %arg4: memref<8x256xf32, #tpu.memory_space<vmem>>, %arg5: memref<8x256xf32, #tpu.memory_space<vmem>>, %arg6: memref<8x256xf32, #tpu.memory_space<vmem>>) attributes {dimension_semantics = [], scalar_prefetch = 0 : i64, scratch_operands = 0 : i64, tpu.core_type = #tpu.core_type<tc>} {
    %c0 = arith.constant 0 : index
    %0 = memref.load %arg0[%c0] : memref<1xf32, #tpu.memory_space<smem>>
    %c0_0 = arith.constant 0 : index
    %c0_1 = arith.constant 0 : index
    %1 = vector.load %arg4[%c0_0, %c0_1] : memref<8x256xf32, #tpu.memory_space<vmem>>, vector<8x256xf32>
    %c0_2 = arith.constant 0 : index
    %c0_3 = arith.constant 0 : index
    %2 = vector.load %arg3[%c0_2, %c0_3] : memref<8x256xf32, #tpu.memory_space<vmem>>, vector<8x256xf32>
    %c0_4 = arith.constant 0 : index
    %c0_5 = arith.constant 0 : index
    %3 = vector.load %arg4[%c0_4, %c0_5] : memref<8x256xf32, #tpu.memory_space<vmem>>, vector<8x256xf32>
    %4 = arith.subf %2, %3 : vector<8x256xf32>
    %5 = vector.broadcast %0 : f32 to vector<8x256xf32>
    %6 = arith.mulf %5, %4 : vector<8x256xf32>
    %7 = arith.addf %1, %6 : vector<8x256xf32>
    %cst = arith.constant 0.000000e+00 : f32
    %8 = vector.broadcast %cst : f32 to vector<8x128xf32>
    %9 = tpu.concatenate %8, %7, %8 in 1 : vector<8x128xf32>, vector<8x256xf32>, vector<8x128xf32> -> vector<8x512xf32>
    %10 = vector.extract_strided_slice %9 {offsets = [0, 111], sizes = [8, 256], strides = [1, 1]} : vector<8x512xf32> to vector<8x256xf32>
    %c0_6 = arith.constant 0 : index
    %c0_7 = arith.constant 0 : index
    %c0_8 = arith.constant 0 : index
    %11 = vector.load %arg1[%c0_6, %c0_7, %c0_8] : memref<9x8x8xf32, #tpu.memory_space<vmem>>, vector<1x8x8xf32>
    %12 = vector.shape_cast %11 : vector<1x8x8xf32> to vector<8x8xf32>
    %cst_9 = arith.constant dense<0.000000e+00> : vector<8x256xf32>
    %13 = tpu.matmul %12, %10, %cst_9 {dimension_numbers = #tpu.dot_dimension_numbers<[1], [0], [0], [1], [0, 0, 1, 1], [], []>} : vector<8x8xf32>, vector<8x256xf32>, vector<8x256xf32> -> vector<8x256xf32>
    %14 = vector.extract_strided_slice %9 {offsets = [0, 127], sizes = [8, 256], strides = [1, 1]} : vector<8x512xf32> to vector<8x256xf32>
    %c3 = arith.constant 3 : index
    %c0_10 = arith.constant 0 : index
    %c0_11 = arith.constant 0 : index
    %15 = vector.load %arg1[%c3, %c0_10, %c0_11] : memref<9x8x8xf32, #tpu.memory_space<vmem>>, vector<1x8x8xf32>
    %16 = vector.shape_cast %15 : vector<1x8x8xf32> to vector<8x8xf32>
    %cst_12 = arith.constant dense<0.000000e+00> : vector<8x256xf32>
    %17 = tpu.matmul %16, %14, %cst_12 {dimension_numbers = #tpu.dot_dimension_numbers<[1], [0], [0], [1], [0, 0, 1, 1], [], []>} : vector<8x8xf32>, vector<8x256xf32>, vector<8x256xf32> -> vector<8x256xf32>
    %18 = arith.addf %13, %17 : vector<8x256xf32>
    %19 = vector.extract_strided_slice %9 {offsets = [0, 143], sizes = [8, 256], strides = [1, 1]} : vector<8x512xf32> to vector<8x256xf32>
    %c6 = arith.constant 6 : index
    %c0_13 = arith.constant 0 : index
    %c0_14 = arith.constant 0 : index
    %20 = vector.load %arg1[%c6, %c0_13, %c0_14] : memref<9x8x8xf32, #tpu.memory_space<vmem>>, vector<1x8x8xf32>
    %21 = vector.shape_cast %20 : vector<1x8x8xf32> to vector<8x8xf32>
    %cst_15 = arith.constant dense<0.000000e+00> : vector<8x256xf32>
    %22 = tpu.matmul %21, %19, %cst_15 {dimension_numbers = #tpu.dot_dimension_numbers<[1], [0], [0], [1], [0, 0, 1, 1], [], []>} : vector<8x8xf32>, vector<8x256xf32>, vector<8x256xf32> -> vector<8x256xf32>
    %23 = arith.addf %18, %22 : vector<8x256xf32>
    %24 = vector.extract_strided_slice %9 {offsets = [0, 112], sizes = [8, 256], strides = [1, 1]} : vector<8x512xf32> to vector<8x256xf32>
    %c1 = arith.constant 1 : index
    %c0_16 = arith.constant 0 : index
    %c0_17 = arith.constant 0 : index
    %25 = vector.load %arg1[%c1, %c0_16, %c0_17] : memref<9x8x8xf32, #tpu.memory_space<vmem>>, vector<1x8x8xf32>
    %26 = vector.shape_cast %25 : vector<1x8x8xf32> to vector<8x8xf32>
    %cst_18 = arith.constant dense<0.000000e+00> : vector<8x256xf32>
    %27 = tpu.matmul %26, %24, %cst_18 {dimension_numbers = #tpu.dot_dimension_numbers<[1], [0], [0], [1], [0, 0, 1, 1], [], []>} : vector<8x8xf32>, vector<8x256xf32>, vector<8x256xf32> -> vector<8x256xf32>
    %28 = vector.extract_strided_slice %9 {offsets = [0, 128], sizes = [8, 256], strides = [1, 1]} : vector<8x512xf32> to vector<8x256xf32>
    %c4 = arith.constant 4 : index
    %c0_19 = arith.constant 0 : index
    %c0_20 = arith.constant 0 : index
    %29 = vector.load %arg1[%c4, %c0_19, %c0_20] : memref<9x8x8xf32, #tpu.memory_space<vmem>>, vector<1x8x8xf32>
    %30 = vector.shape_cast %29 : vector<1x8x8xf32> to vector<8x8xf32>
    %cst_21 = arith.constant dense<0.000000e+00> : vector<8x256xf32>
    %31 = tpu.matmul %30, %28, %cst_21 {dimension_numbers = #tpu.dot_dimension_numbers<[1], [0], [0], [1], [0, 0, 1, 1], [], []>} : vector<8x8xf32>, vector<8x256xf32>, vector<8x256xf32> -> vector<8x256xf32>
    %32 = arith.addf %27, %31 : vector<8x256xf32>
    %33 = vector.extract_strided_slice %9 {offsets = [0, 144], sizes = [8, 256], strides = [1, 1]} : vector<8x512xf32> to vector<8x256xf32>
    %c7 = arith.constant 7 : index
    %c0_22 = arith.constant 0 : index
    %c0_23 = arith.constant 0 : index
    %34 = vector.load %arg1[%c7, %c0_22, %c0_23] : memref<9x8x8xf32, #tpu.memory_space<vmem>>, vector<1x8x8xf32>
    %35 = vector.shape_cast %34 : vector<1x8x8xf32> to vector<8x8xf32>
    %cst_24 = arith.constant dense<0.000000e+00> : vector<8x256xf32>
    %36 = tpu.matmul %35, %33, %cst_24 {dimension_numbers = #tpu.dot_dimension_numbers<[1], [0], [0], [1], [0, 0, 1, 1], [], []>} : vector<8x8xf32>, vector<8x256xf32>, vector<8x256xf32> -> vector<8x256xf32>
    %37 = arith.addf %32, %36 : vector<8x256xf32>
    %38 = vector.extract_strided_slice %9 {offsets = [0, 113], sizes = [8, 256], strides = [1, 1]} : vector<8x512xf32> to vector<8x256xf32>
    %c2 = arith.constant 2 : index
    %c0_25 = arith.constant 0 : index
    %c0_26 = arith.constant 0 : index
    %39 = vector.load %arg1[%c2, %c0_25, %c0_26] : memref<9x8x8xf32, #tpu.memory_space<vmem>>, vector<1x8x8xf32>
    %40 = vector.shape_cast %39 : vector<1x8x8xf32> to vector<8x8xf32>
    %cst_27 = arith.constant dense<0.000000e+00> : vector<8x256xf32>
    %41 = tpu.matmul %40, %38, %cst_27 {dimension_numbers = #tpu.dot_dimension_numbers<[1], [0], [0], [1], [0, 0, 1, 1], [], []>} : vector<8x8xf32>, vector<8x256xf32>, vector<8x256xf32> -> vector<8x256xf32>
    %42 = vector.extract_strided_slice %9 {offsets = [0, 129], sizes = [8, 256], strides = [1, 1]} : vector<8x512xf32> to vector<8x256xf32>
    %c5 = arith.constant 5 : index
    %c0_28 = arith.constant 0 : index
    %c0_29 = arith.constant 0 : index
    %43 = vector.load %arg1[%c5, %c0_28, %c0_29] : memref<9x8x8xf32, #tpu.memory_space<vmem>>, vector<1x8x8xf32>
    %44 = vector.shape_cast %43 : vector<1x8x8xf32> to vector<8x8xf32>
    %cst_30 = arith.constant dense<0.000000e+00> : vector<8x256xf32>
    %45 = tpu.matmul %44, %42, %cst_30 {dimension_numbers = #tpu.dot_dimension_numbers<[1], [0], [0], [1], [0, 0, 1, 1], [], []>} : vector<8x8xf32>, vector<8x256xf32>, vector<8x256xf32> -> vector<8x256xf32>
    %46 = arith.addf %41, %45 : vector<8x256xf32>
    %47 = vector.extract_strided_slice %9 {offsets = [0, 145], sizes = [8, 256], strides = [1, 1]} : vector<8x512xf32> to vector<8x256xf32>
    %c8 = arith.constant 8 : index
    %c0_31 = arith.constant 0 : index
    %c0_32 = arith.constant 0 : index
    %48 = vector.load %arg1[%c8, %c0_31, %c0_32] : memref<9x8x8xf32, #tpu.memory_space<vmem>>, vector<1x8x8xf32>
    %49 = vector.shape_cast %48 : vector<1x8x8xf32> to vector<8x8xf32>
    %cst_33 = arith.constant dense<0.000000e+00> : vector<8x256xf32>
    %50 = tpu.matmul %49, %47, %cst_33 {dimension_numbers = #tpu.dot_dimension_numbers<[1], [0], [0], [1], [0, 0, 1, 1], [], []>} : vector<8x8xf32>, vector<8x256xf32>, vector<8x256xf32> -> vector<8x256xf32>
    %51 = arith.addf %46, %50 : vector<8x256xf32>
    %52 = tpu.iota {dimensions = array<i32: 1>} : vector<8x256xi32>
    %c16_i32 = arith.constant 16 : i32
    %c0_i32 = arith.constant 0 : i32
    %53 = arith.cmpi eq, %c16_i32, %c0_i32 : i32
    %c1_i32 = arith.constant 1 : i32
    %54 = arith.select %53, %c1_i32, %c16_i32 : i32
    %55 = vector.broadcast %54 : i32 to vector<8x256xi32>
    %56 = arith.remsi %52, %55 : vector<8x256xi32>
    %c0_i32_34 = arith.constant 0 : i32
    %57 = vector.broadcast %c0_i32_34 : i32 to vector<8x256xi32>
    %58 = arith.cmpi ne, %56, %57 : vector<8x256xi32>
    %c0_i32_35 = arith.constant 0 : i32
    %59 = vector.broadcast %c0_i32_35 : i32 to vector<8x256xi32>
    %60 = arith.cmpi slt, %56, %59 : vector<8x256xi32>
    %c0_i32_36 = arith.constant 0 : i32
    %61 = arith.cmpi slt, %54, %c0_i32_36 : i32
    %62 = vector.broadcast %61 : i1 to vector<8x256xi1>
    %63 = vector.broadcast %62 : vector<8x256xi1> to vector<8x256xi1>
    %64 = arith.xori %60, %63 : vector<8x256xi1>
    %65 = arith.andi %64, %58 : vector<8x256xi1>
    %66 = vector.broadcast %54 : i32 to vector<8x256xi32>
    %67 = arith.addi %56, %66 : vector<8x256xi32>
    %68 = arith.select %65, %67, %56 : vector<8x256xi1>, vector<8x256xi32>
    %c0_i32_37 = arith.constant 0 : i32
    %69 = vector.broadcast %c0_i32_37 : i32 to vector<8x256xi32>
    %70 = arith.cmpi ne, %68, %69 : vector<8x256xi32>
    %71 = arith.extui %70 : vector<8x256xi1> to vector<8x256xi32>
    %72 = arith.sitofp %71 : vector<8x256xi32> to vector<8x256xf32>
    %c15_i32 = arith.constant 15 : i32
    %73 = vector.broadcast %c15_i32 : i32 to vector<8x256xi32>
    %74 = arith.cmpi ne, %68, %73 : vector<8x256xi32>
    %75 = arith.extui %74 : vector<8x256xi1> to vector<8x256xi32>
    %76 = arith.sitofp %75 : vector<8x256xi32> to vector<8x256xf32>
    %77 = arith.mulf %72, %23 : vector<8x256xf32>
    %78 = arith.addf %37, %77 : vector<8x256xf32>
    %79 = arith.mulf %76, %51 : vector<8x256xf32>
    %80 = arith.addf %78, %79 : vector<8x256xf32>
    %c0_38 = arith.constant 0 : index
    %c0_39 = arith.constant 0 : index
    %81 = vector.load %arg2[%c0_38, %c0_39] : memref<8x1xf32, #tpu.memory_space<vmem>>, vector<8x1xf32>
    %82 = vector.broadcast %81 : vector<8x1xf32> to vector<8x256xf32>
    %83 = arith.addf %80, %82 : vector<8x256xf32>
    %c0_40 = arith.constant 0 : index
    %c0_41 = arith.constant 0 : index
    %84 = vector.load %arg5[%c0_40, %c0_41] : memref<8x256xf32, #tpu.memory_space<vmem>>, vector<8x256xf32>
    %85 = arith.addf %83, %84 : vector<8x256xf32>
    %c0_42 = arith.constant 0 : index
    %c0_43 = arith.constant 0 : index
    %86 = vector.load %arg6[%c0_42, %c0_43] : memref<8x256xf32, #tpu.memory_space<vmem>>, vector<8x256xf32>
    tpu.vector_store %arg6[%c0_42, %c0_43], %85 {strides = array<i32>} : memref<8x256xf32, #tpu.memory_space<vmem>>, vector<8x256xf32>,
    return
  }
}

</mosaic_0001>

<bundles_post_ra>
// kernel: tpu_custom_call.1
= control target key start
LH: loop header
LB: loop body
LE: loop exit
PB: predicated region body
PF: predicated region fallthrough
CT: control target
= control target key end

     0   :  { %v962_v4 = vmov 0.0   ;;  %s963_s29 = smov 17   ;;  %s1116_s0 = inlined_call_operand.<no memory space> [shape: f32[1], index: 0, kind: input, shape index: {}]   ;;  %s1117_s1 = inlined_call_operand.vmem [shape: f32[9,8,8], index: 1, kind: input, shape index: {}]   ;;  %s1118_s2 = inlined_call_operand.vmem [shape: f32[8,1], index: 2, kind: input, shape index: {}]   ;;  %s1119_s3 = inlined_call_operand.vmem [shape: f32[8,256], index: 3, kind: input, shape index: {}]   ;;  %s1120_s4 = inlined_call_operand.vmem [shape: f32[8,256], index: 4, kind: input, shape index: {}]   ;;  %s1121_s5 = inlined_call_operand.vmem [shape: f32[8,256], index: 5, kind: input, shape index: {}]   ;;  %s1122_s6 = inlined_call_operand.hbm [shape: f32[8,256], index: 6, kind: output, shape index: {}]  }
   0x1   :  { %v26_v0 = vld [vmem:[%s1120_s4] sm:$0xff]  ;;  %v32_v2 = vstv %s1116_s0  ;;  %v27_v3 = vld [vmem:[%s1120_s4 + $0x8] sm:$0xff]  ;;  %129 = vrot.lane.b32.xlu1 %v962_v4, %s963_s29  ;;  %207 = vmatprep.mubr.f32.mxu0 %v962_v4 }
   0x2   :  { %v28_v1 = vld [vmem:[%s1119_s3] sm:$0xff]  ;;  %v29_v6 = vld [vmem:[%s1119_s3 + $0x8] sm:$0xff]  ;;  %122 = vmatprep.mubr.f32.mxu1 %v962_v4 }
   0x3   :  { %v30_v5 = vsub.f32 %v28_v1, %v26_v0  ;;  %v31_v7 = vsub.f32 %v29_v6, %v27_v3 }
   0x4   :  { %12 = vsyncpa [#allocation4], 0  ;;  %s964_s0 = smov 1   ;;  %s965_s4 = smov 113   ;;  %v970_v12 = vmov 0   ;;  %v865_v13 = vld [vmem:[%s1118_s2] sm:$0xff]  ;;  %v818_v6 = vlaneseq }
   0x5   :  { %v33_v8 = vmul.f32 %v32_v2, %v30_v5  ;;  %v34_v9 = vmul.f32 %v32_v2, %v31_v7  ;;  %s966_s3 = smov 127   ;;  %s967_s8 = smov 16   ;;  %937 = vset.pattern.permute.xlu0 %v970_v12  ;;  %vm135_vm0 = vcmask 138240   ;;  %v37_v20 = vld [vmem:[%s1117_s1] sm:$0xff]  ;;  %vm54_vm1 = vcmask 64512   ;;  %v893_v26 = vld [vmem:[%s1117_s1 + $0x18] sm:$0xff] }
   0x6   :  { %s968_s9 = smov 15   ;;  %s969_s10 = smov 112   ;;  %vm49_vm2 = vcmask 7168   ;;  %vm222_vm3 = vcmask 924672   ;;  %v899_v30 = vld [vmem:[%s1117_s1 + $0x20] sm:$0xff]  ;;  %v896_v33 = vld [vmem:[%s1117_s1 + $0x30] sm:$0xff] }
   0x7   :  { %v1026_v10 = vadd.f32 %v33_v8, %v26_v0  ;;  %v36_v11 = vadd.f32 %v34_v9, %v27_v3  ;;  %s971_s11 = smov 111   ;;  %vm565_vm4 = vcmask 1039360   ;;  %v905_v38 = vld [vmem:[%s1117_s1 + $0x28] sm:$0xff]  ;;  %vm387_vm5 = vcmask 130048   ;;  %v904_v47 = vld [vmem:[%s1117_s1 + $0x10] sm:$0xff]  ;;  %v908_v59 = vld [vmem:[%s1117_s1 + $0x40] sm:$0xff] }
   0x8   :  { %vm650_vm6 = vcmask 121856   ;;  %v898_v50 = vld [vmem:[%s1117_s1 + $0x8] sm:$0xff]  ;;  %vm474_vm7 = vcmask 916480   ;;  %vm737_vm8 = vcmask 908288   ;;  %v902_v61 = vld [vmem:[%s1117_s1 + $0x38] sm:$0xff]  ;;  %v819_v7 = vand.u32 127, %v818_v6 }
   0x9   :  { %45 = vrot.lane.b32.xlu1 %v1026_v10, %s964_s0  ;;  %131 = vrot.lane.b32.xlu0 %v1026_v10, %s963_s29 }
   0xa   :  { %v820_v8 = vadd.s32 128, %v819_v7  ;;  %v825_v9 = vand.u32 15, %v819_v7 }
   0xc   :  { %vm845_vm9 = vcmp.ne.s32.totalorder %v825_v9, 0  ;;  %vm851_vm11 = vcmp.ne.s32.totalorder %v825_v9, 15 }
   0xd   :  { %218 = vrot.lane.b32.xlu1 %v36_v11, %s965_s4  ;;  %133 = vrot.lane.b32.xlu0 %v36_v11, %s963_s29 }
  0x11   :  { %43 = vrot.lane.b32.xlu1 %v962_v4, %s964_s0  ;;  %47 = vrot.lane.b32.xlu0 %v36_v11, %s964_s0 }
  0x15   :  { %561 = vrot.lane.b32.xlu1 %v36_v11, %s966_s3  ;;  %220 = vrot.lane.b32.xlu0 %v962_v4, %s965_s4 }
  0x19   :  { %559 = vrot.lane.b32.xlu1 %v1026_v10, %s966_s3  ;;  %216 = vrot.lane.b32.xlu0 %v1026_v10, %s965_s4 }
  0x1d   :  { %385 = vrot.lane.b32.xlu1 %v36_v11, %s967_s8  ;;  %563 = vrot.lane.b32.xlu0 %v962_v4, %s966_s3  ;;  %s972_s3 = smov [#allocation3]  }
  0x21   :  { %648 = vrot.lane.b32.xlu1 %v36_v11, %s968_s9  ;;  %383 = vrot.lane.b32.xlu0 %v1026_v10, %s967_s8 }
  0x25   :  { %644 = vrot.lane.b32.xlu1 %v962_v4, %s968_s9  ;;  %646 = vrot.lane.b32.xlu0 %v1026_v10, %s968_s9 }
  0x29   :  { %472 = vrot.lane.b32.xlu1 %v962_v4, %s969_s10  ;;  %381 = vrot.lane.b32.xlu0 %v962_v4, %s967_s8  ;;  %s885_s8 = sshll.u32 %s972_s3, 4  ;;  %s886_s8 = int_to_ptr.vmem [resolvable:$true] %s885_s8 }
  0x2a   :  { %s938_s9 = scalar_lea.vmem %s886_s8, 256  ;;  %p943_p1 = scmp.lt.s32.totalorder %s886_s8, %s886_s8 }
  0x2b   :  { %p939_p0 = scmp.ne.s32.totalorder %s886_s8, %s938_s9  ;;  %p944_p2 = scmp.lt.s32.totalorder %s938_s9, %s938_s9 }
  0x2d   :  { %735 = vrot.lane.b32.xlu1 %v962_v4, %s971_s11  ;;  %470 = vrot.lane.b32.xlu0 %v36_v11, %s969_s10  ;;  %p945_p3 = por %p944_p2, %p943_p1 }
  0x2f   :  { %p946_p4 = pnand %p945_p3, %p939_p0 }
  0x31   :  { %731 = vrot.lane.b32.xlu1 %v1026_v10, %s971_s11  ;;  %733 = vrot.lane.b32.xlu0 %v36_v11, %s971_s11 }
  0x35   :  { %468 = vrot.lane.b32.xlu0 %v1026_v10, %s969_s10 }
  0x39   :  { %868 = vperm.xlu0 %937, %v865_v13  }
  0x73   :  { %v130_v14 = vpop.permute.xlu1 %129 }
  0x7b   :  { %v46_v15 = vpop.permute.xlu1 %45  ;;  %v132_v16 = vpop.permute.xlu0 %131 }
  0x7c   :  { %v136_v21 = vsel %vm135_vm0, %v130_v14, %v132_v16  ;;  %v912_v14 = vsel %vm851_vm11, 1.0, %v962_v4 }
  0x7f   :  { %v219_v17 = vpop.permute.xlu1 %218  ;;  %v134_v18 = vpop.permute.xlu0 %133 }
  0x80   :  { %v137_v19 = vsel %vm135_vm0, %v132_v16, %v134_v18 }
  0x81   :  { %143 = vmatprep.subr.mxu0 %v137_v19 }
  0x82   :  { %144 = vmatpush1.msra.mxu0 %v136_v21 }
  0x83   :  { %v44_v22 = vpop.permute.xlu1 %43  ;;  %v48_v23 = vpop.permute.xlu0 %47  ;;  %895 = vmatmul.mubr.msk.f32.vlgmr.msra.gmra.mrb[0].mxu0 %vm54_vm1, %v37_v20 }
  0x84   :  { %v51_v24 = vsel %vm49_vm2, %v46_v15, %v48_v23  ;;  %v50_v25 = vsel %vm49_vm2, %v44_v22, %v46_v15  ;;  %294 = vmatprep.mubr.f32.mxu0 %v962_v4 }
  0x85   :  { %58 = vmatprep.subr.mxu1 %v51_v24 }
  0x86   :  { %59 = vmatpush1.msra.mxu1 %v50_v25 }
  0x87   :  { %v562_v27 = vpop.permute.xlu1 %561  ;;  %v221_v28 = vpop.permute.xlu0 %220  ;;  %310 = vmatprep.subr.mxu1 %v36_v11  ;;  %894 = vmatmul.mubr.msk.f32.vlgmr.msra.gmra.mrb[0].mxu1 %vm54_vm1, %v893_v26  ;;  %v910_v11 = vsel %vm845_vm9, 1.0, %v962_v4 }
  0x88   :  { %v224_v29 = vsel %vm222_vm3, %v219_v17, %v221_v28  ;;  %311 = vmatpush1.msra.mxu1 %v1026_v10  ;;  %374 = vmatprep.mubr.f32.mxu1 %v962_v4  ;;  %v832_v10 = vand.u32 15, %v820_v8  ;;  %v873_v28 = vld [vmem:[%s1121_s5] sm:$0xff] }
  0x89   :  { %230 = vmatprep.subr.mxu0 %v224_v29  ;;  %v874_v29 = vld [vmem:[%s1121_s5 + $0x8] sm:$0xff] }
  0x8a   :  { %vm846_vm10 = vcmp.ne.s32.totalorder %v832_v10, 0  ;;  %vm852_vm12 = vcmp.ne.s32.totalorder %v832_v10, 15 }
  0x8b   :  { %v560_v31 = vpop.permute.xlu1 %559  ;;  %v217_v32 = vpop.permute.xlu0 %216  ;;  %900 = vmatmul.mubr.msk.f32.vlgmr.msra.gmra.mrb[2].mxu1 %vm54_vm1, %v899_v30  ;;  %v911_v13 = vsel %vm846_vm10, 1.0, %v962_v4  ;;  %v913_v16 = vsel %vm852_vm12, 1.0, %v962_v4 }
  0x8c   :  { %v223_v34 = vsel %vm222_vm3, %v217_v32, %v219_v17  ;;  %459 = vmatprep.mubr.f32.mxu1 %v962_v4  ;;  %v566_v39 = vsel %vm565_vm4, %v560_v31, %v562_v27 }
  0x8d   :  { %231 = vmatpush1.msra.mxu0 %v223_v34 }
  0x8e   :  { %897 = vmatmul.mubr.msk.f32.vlgmr.msra.gmra.mrb[0].mxu0 %vm54_vm1, %v896_v33 }
  0x8f   :  { %v386_v35 = vpop.permute.xlu1 %385  ;;  %v564_v36 = vpop.permute.xlu0 %563  ;;  %637 = vmatprep.mubr.f32.mxu0 %v962_v4 }
  0x90   :  { %v567_v37 = vsel %vm565_vm4, %v562_v27, %v564_v36 }
  0x91   :  { %573 = vmatprep.subr.mxu0 %v567_v37 }
  0x92   :  { %574 = vmatpush1.msra.mxu0 %v566_v39 }
  0x93   :  { %v649_v40 = vpop.permute.xlu1 %648  ;;  %v384_v41 = vpop.permute.xlu0 %383  ;;  %906 = vmatmul.mubr.msk.f32.vlgmr.msra.gmra.mrb[2].mxu0 %vm54_vm1, %v905_v38 }
  0x94   :  { %v389_v42 = vsel %vm387_vm5, %v384_v41, %v386_v35  ;;  %722 = vmatprep.mubr.f32.mxu0 %v962_v4 }
  0x95   :  { %395 = vmatprep.subr.mxu1 %v389_v42 }
  0x97   :  { %v645_v43 = vpop.permute.xlu1 %644  ;;  %v647_v44 = vpop.permute.xlu0 %646 }
  0x98   :  { %v651_v45 = vsel %vm650_vm6, %v645_v43, %v647_v44  ;;  %v652_v46 = vsel %vm650_vm6, %v647_v44, %v649_v40 }
  0x99   :  { %658 = vmatprep.subr.mxu0 %v652_v46 }
  0x9a   :  { %659 = vmatpush1.msra.mxu0 %v651_v45 }
  0x9b   :  { %v473_v48 = vpop.permute.xlu1 %472  ;;  %v382_v49 = vpop.permute.xlu0 %381  ;;  %907 = vmatmul.mubr.msk.f32.vlgmr.msra.gmra.mrb[2].mxu0 %vm54_vm1, %v904_v47 }
  0x9c   :  { %v388_v51 = vsel %vm387_vm5, %v382_v49, %v384_v41  ;;  %809 = vmatprep.mubr.f32.mxu0 %v962_v4 }
  0x9d   :  { %396 = vmatpush1.msra.mxu1 %v388_v51 }
  0x9e   :  { %901 = vmatmul.mubr.msk.f32.vlgmr.msra.gmra.mrb[2].mxu1 %vm54_vm1, %v898_v50 }
  0x9f   :  { %v736_v52 = vpop.permute.xlu1 %735  ;;  %v471_v53 = vpop.permute.xlu0 %470  ;;  %546 = vmatprep.mubr.f32.mxu1 %v962_v4 }
  0xa0   :  { %v476_v54 = vsel %vm474_vm7, %v471_v53, %v473_v48 }
  0xa1   :  { %482 = vmatprep.subr.mxu1 %v476_v54 }
  0xa3   :  { %v732_v55 = vpop.permute.xlu1 %731  ;;  %v734_v56 = vpop.permute.xlu0 %733 }
  0xa4   :  { %v738_v57 = vsel %vm737_vm8, %v732_v55, %v734_v56  ;;  %v739_v58 = vsel %vm737_vm8, %v734_v56, %v736_v52 }
  0xa5   :  { %745 = vmatprep.subr.mxu0 %v739_v58 }
  0xa6   :  { %746 = vmatpush1.msra.mxu0 %v738_v57 }
  0xa7   :  { %909 = vmatmul.mubr.msk.f32.vlgmr.msra.gmra.mrb[2].mxu0 %vm54_vm1, %v908_v59  ;;  %v469_v60 = vpop.permute.xlu0 %468 }
  0xa8   :  { %v475_v62 = vsel %vm474_vm7, %v469_v60, %v471_v53 }
  0xa9   :  { %483 = vmatpush1.msra.mxu1 %v475_v62 }
  0xaa   :  { %903 = vmatmul.mubr.msk.f32.vlgmr.msra.gmra.mrb[2].mxu1 %vm54_vm1, %v902_v61 }
  0xb8   :  { %v869_v25 = vpop.permute.xlu0 %868 }
 0x15a   :  { %v124_v63 = vpop.f32.mrb[0].mxu1 }
 0x15b   :  { %v126_v0 = vpop.f32.mrb[1].mxu1 }
 0x161   :  { %v296_v1 = vpop.f32.mrb[0].mxu0 }
 0x162   :  { %v914_v2 = vadd.f32 %v296_v1, %v124_v63  ;;  %v298_v3 = vpop.f32.mrb[1].mxu0 }
 0x163   :  { %v915_v5 = vadd.f32 %v298_v3, %v126_v0 }
 0x164   :  { %v857_v17 = vmul.f32 %v914_v2, %v910_v11 }
 0x165   :  { %v858_v19 = vmul.f32 %v915_v5, %v911_v13 }
 0x17a   :  { %v811_v12 = vpop.f32.mrb[2].mxu0 }
 0x17b   :  { %v813_v15 = vpop.f32.mrb[3].mxu0  ;;  %v861_v20 = vmul.f32 %v912_v14, %v811_v12 }
 0x17c   :  { %v862_v23 = vmul.f32 %v913_v16, %v813_v15 }
 0x17d   :  { %v548_v18 = vpop.f32.mrb[2].mxu1 }
 0x17e   :  { %v859_v21 = vadd.f32 %v857_v17, %v548_v18  ;;  %v550_v22 = vpop.f32.mrb[3].mxu1 }
 0x17f   :  { %v860_v24 = vadd.f32 %v858_v19, %v550_v22 }
 0x180   :  { %v863_v26 = vadd.f32 %v861_v20, %v859_v21 }
 0x181   :  { %v864_v27 = vadd.f32 %v862_v23, %v860_v24 }
 0x182   :  { %v871_v4 = vadd.f32 %v869_v25, %v863_v26 }
 0x183   :  { %v872_v30 = vadd.f32 %v869_v25, %v864_v27 }
 0x184   :  { %v875_v31 = vadd.f32 %v873_v28, %v871_v4 }
 0x185   :  { %v876_v32 = vadd.f32 %v874_v29, %v872_v30 }
 0x186   :  { %877 = vst [vmem:[#allocation3] sm:$0xff] %v875_v31 }
 0x187   :  { %878 = vst [vmem:[#allocation3 + $0x8] sm:$0xff] %v876_v32 }
 0x188   :  { %949 = shalt.err (!%p946_p4)
}
 0x189   :  { %s950_s5 = scalar_lea.hbm %s1122_s6, 256 }
 0x18a   :  { %p951_p5 = scmp.ne.s32.totalorder %s1122_s6, %s950_s5  ;;  %p954_p6 = scmp.lt.u32.totalorder %s950_s5, %s1122_s6 }
 0x18c   :  { %p956_p7 = pnand %p954_p6, %p951_p5 }
 0x18e   :  { %959 = shalt.err (!%p956_p7)
}
 0x18f   :  { %888 = dma.vmem_to_hbm [thread:$0]  %s886_s8, 256, %s1122_s6, [#allocation4]  }
 0x190   :  { %960 = dma.done.wait [#allocation4], 256  }
 0x191   :  { %961 = vsyncadd [#allocation4], 4294967040 }
 0x192   :  { %892 = vsyncpa [#allocation4], 1 }

</bundles_post_ra>
